<compile_context>
chip_gen: v6e
topology: v6e:2x2x1
jax: 0.10.0
libtpu: 0.0.40
codegen_flags: <defaults>
</compile_context>

<pallas_src>
import functools

import jax
import jax.numpy as jnp
from jax.experimental import pallas as pl
from jax.experimental.pallas import tpu as pltpu


def _round_up(x, m):
    return (x + m - 1) // m * m


# ---------------------------------------------------------------------------
# Kernel 1: image encoder (fused linears + tanh + optional L2-norm).
# key/val weights concatenated -> a single (Dt, 2H) MXU matmul.
# ---------------------------------------------------------------------------
def _enc_img_kernel(x_ref, wiT_ref, bi_ref, wkvT_ref, bkv_ref,
                    init_ref, keys_ref, vals_ref, *, norm_img, hp):
    x = x_ref[...].astype(jnp.bfloat16)
    init = jnp.dot(x, wiT_ref[...], preferred_element_type=jnp.float32) + bi_ref[...]
    kv = (jnp.dot(init.astype(jnp.bfloat16), wkvT_ref[...],
                  preferred_element_type=jnp.float32) + bkv_ref[...])
    keys = jnp.tanh(kv[:, :hp])          # 128-aligned slices
    vals = kv[:, hp:]
    # Reference ordering: keys/vals from UN-normalized init; normalize after.
    if norm_img:  # F.normalize(p=2, dim=-1): x / max(||x||_2, 1e-12)
        init = init / jnp.maximum(
            jnp.sqrt(jnp.sum(init * init, axis=-1, keepdims=True)), 1e-12)
        vals = vals / jnp.maximum(
            jnp.sqrt(jnp.sum(vals * vals, axis=-1, keepdims=True)), 1e-12)
    init_ref[...] = init
    keys_ref[...] = keys
    vals_ref[...] = vals


def enc_img(feats_all, params, norm_img):
    B3p, Di = feats_all.shape
    Dtp = params["wiT"].shape[1]
    Hp = params["hp"]
    return pl.pallas_call(
        functools.partial(_enc_img_kernel, norm_img=norm_img, hp=Hp),
        out_shape=(jax.ShapeDtypeStruct((B3p, Dtp), jnp.float32),
                   jax.ShapeDtypeStruct((B3p, Hp), jnp.float32),
                   jax.ShapeDtypeStruct((B3p, Hp), jnp.float32)),
        grid=(1,),
        in_specs=[pl.BlockSpec((B3p, Di), lambda i: (0, 0)),
                  pl.BlockSpec((Di, Dtp), lambda i: (0, 0)),
                  pl.BlockSpec((1, Dtp), lambda i: (0, 0)),
                  pl.BlockSpec((Dtp, 2 * Hp), lambda i: (0, 0)),
                  pl.BlockSpec((1, 2 * Hp), lambda i: (0, 0))],
        out_specs=(pl.BlockSpec((B3p, Dtp), lambda i: (0, 0)),
                   pl.BlockSpec((B3p, Hp), lambda i: (0, 0)),
                   pl.BlockSpec((B3p, Hp), lambda i: (0, 0))),
    )(feats_all, params["wiT"], params["bi"], params["wkvT"], params["bkv"])


# ---------------------------------------------------------------------------
# Kernel 2: one LSTM layer, time streamed in chunks over a grid axis.
#   x_flat:  (T_pad*Bp, Din)  time-major flattened, f32
#   per chunk: x_proj = x_chunk @ W_ih^T + b  (one big matmul into scratch)
#   per step:  gates = x_proj[t] + h @ W_hh^T   (small recurrent matmul)
#   Last layer fuses calc_gate + gating mix into the output write.
# ---------------------------------------------------------------------------
def _lstm_chunk_kernel(x_ref, wih_ref, whh_ref, b_ref, *rest,
                       hp, bp, tc, fuse_gate, use_gate):
    if fuse_gate:
        keys_ref, vals_ref, feat_ref, gate_ref, h_ref, c_ref, xp_ref = rest
    else:
        out_ref, h_ref, c_ref, xp_ref = rest

    @pl.when(pl.program_id(0) == 0)
    def _():
        h_ref[...] = jnp.zeros_like(h_ref)
        c_ref[...] = jnp.zeros_like(c_ref)

    # Hoisted input projection for the whole chunk (bias folded in once).
    xp_ref[...] = (jnp.dot(x_ref[...].astype(jnp.bfloat16), wih_ref[...],
                           preferred_element_type=jnp.float32) + b_ref[...])

    whh = whh_ref[...]
    if fuse_gate:
        keys = keys_ref[...]
        vals = vals_ref[...]

    def step(t, carry):
        r0 = pl.multiple_of(t * bp, bp)
        gates = xp_ref[pl.ds(r0, bp), :] + jnp.dot(
            h_ref[...].astype(jnp.bfloat16), whh,
            preferred_element_type=jnp.float32)
        i = jax.nn.sigmoid(gates[:, 0 * hp:1 * hp])      # 128-aligned slices
        f = jax.nn.sigmoid(gates[:, 1 * hp:2 * hp])
        g = jnp.tanh(gates[:, 2 * hp:3 * hp])
        o = jax.nn.sigmoid(gates[:, 3 * hp:4 * hp])
        c = f * c_ref[...] + i * g
        h = o * jnp.tanh(c)
        c_ref[...] = c
        h_ref[...] = h
        if fuse_gate:
            gl = jnp.sum(h * keys, axis=-1, keepdims=True)           # (bp, 1)
            if use_gate:
                gsig = jax.nn.sigmoid(gl)
                feat = gsig * vals + (1.0 - gsig) * h
            else:
                feat = h
            feat_ref[pl.ds(r0, bp), :] = feat.astype(feat_ref.dtype)
            gate_ref[pl.ds(r0, bp), :] = gl
        else:
            out_ref[pl.ds(r0, bp), :] = h
        return carry

    jax.lax.fori_loop(0, tc, step, 0, unroll=2)


def lstm_layer(x_flat, lp, keys, vals, *, t_pad, tc, bp, fuse_gate, use_gate):
    nt = t_pad // tc
    din = x_flat.shape[1]
    hp = lp["w_hhT"].shape[0]
    rows = tc * bp
    kern = functools.partial(_lstm_chunk_kernel, hp=hp, bp=bp, tc=tc,
                             fuse_gate=fuse_gate, use_gate=use_gate)
    scratch = [pltpu.VMEM((bp, hp), jnp.float32),          # h
               pltpu.VMEM((bp, hp), jnp.float32),          # c
               pltpu.VMEM((rows, 4 * hp), jnp.float32)]    # chunk x_proj
    base_in = [pl.BlockSpec((rows, din), lambda t: (t, 0)),
               pl.BlockSpec((din, 4 * hp), lambda t: (0, 0)),
               pl.BlockSpec((hp, 4 * hp), lambda t: (0, 0)),
               pl.BlockSpec((1, 4 * hp), lambda t: (0, 0))]
    if fuse_gate:
        in_specs = base_in + [pl.BlockSpec((bp, hp), lambda t: (0, 0)),
                              pl.BlockSpec((bp, hp), lambda t: (0, 0))]
        out_shape = (jax.ShapeDtypeStruct((t_pad * bp, hp), jnp.bfloat16),
                     jax.ShapeDtypeStruct((t_pad * bp, 1), jnp.float32))
        out_specs = (pl.BlockSpec((rows, hp), lambda t: (t, 0)),
                     pl.BlockSpec((rows, 1), lambda t: (t, 0)))
        args = (x_flat, lp["w_ihT"], lp["w_hhT"], lp["b"], keys, vals)
    else:
        in_specs = base_in
        out_shape = jax.ShapeDtypeStruct((t_pad * bp, hp), jnp.float32)
        out_specs = pl.BlockSpec((rows, hp), lambda t: (t, 0))
        args = (x_flat, lp["w_ihT"], lp["w_hhT"], lp["b"])
    return pl.pallas_call(
        kern, out_shape=out_shape, grid=(nt,),
        in_specs=in_specs, out_specs=out_specs, scratch_shapes=scratch,
        compiler_params=pltpu.CompilerParams(dimension_semantics=("arbitrary",)),
    )(*args)


# ---------------------------------------------------------------------------
# Kernel 3: prediction head, vocab padded to 128 and tiled (TV <= 1024) over a
# "parallel" grid axis (megacore-shardable on v7x); bf16 weights/inputs, f32
# accumulation, lane-dense output tiles.
# ---------------------------------------------------------------------------
def _pred_kernel(x_ref, wT_ref, b_ref, o_ref):
    o_ref[...] = (jnp.dot(x_ref[...], wT_ref[...],
                          preferred_element_type=jnp.float32) + b_ref[...])


def pred_head(x_bf16, w_predT, b_pred):
    M, Hp = x_bf16.shape
    Vp = w_predT.shape[1]
    TV = min(Vp, 1024)               # Vp padded at init so TV divides exactly
    NV = Vp // TV
    return pl.pallas_call(
        _pred_kernel,
        out_shape=jax.ShapeDtypeStruct((M, Vp), jnp.float32),
        grid=(NV,),
        in_specs=[pl.BlockSpec((M, Hp), lambda j: (0, 0)),
                  pl.BlockSpec((Hp, TV), lambda j: (0, j)),
                  pl.BlockSpec((1, TV), lambda j: (0, j))],
        out_specs=pl.BlockSpec((M, TV), lambda j: (0, j)),
        compiler_params=pltpu.CompilerParams(dimension_semantics=("parallel",)),
    )(x_bf16, w_predT, b_pred)


# ---------------------------------------------------------------------------
# Glue: batched train-mode forward for all three branches at once
# ---------------------------------------------------------------------------
def _build_indices(lengths, br, B, L, Bp):
    """Flat gather indices (host-side; lengths are static Python ints)."""
    rows_tm, rows_bl = [], []
    for b, sl in enumerate(lengths):
        for t in range(sl):
            rows_tm.append(t * Bp + br * B + b)   # into (L*Bp, ...) time-major
            rows_bl.append(b * L + t)             # into flattened (B, L)
    return (jnp.asarray(rows_tm, jnp.int32), jnp.asarray(rows_bl, jnp.int32))


def model_forward_train(params, batch, *, norm_img=True, use_gate=True):
    (pair_texts, pair_lengths, pair_spans,
     obj1_texts, obj1_lengths, obj1_spans,
     obj2_texts, obj2_lengths, obj2_spans,
     pair_feats, obj1_feats, obj2_feats) = batch

    B, L = pair_texts.shape
    B3 = 3 * B
    B3p = _round_up(B3, 16)          # sublane / bf16-tile aligned batch
    V = params["vocab"]

    # batch the three branches together (and pad batch rows)
    texts_all = jnp.concatenate([pair_texts, obj1_texts, obj2_texts], axis=0)
    feats_all = jnp.concatenate([pair_feats, obj1_feats, obj2_feats],
                                axis=0).reshape(B3, -1)
    if B3p > B3:
        texts_all = jnp.pad(texts_all, ((0, B3p - B3), (0, 0)))
        feats_all = jnp.pad(feats_all, ((0, B3p - B3), (0, 0)))

    img_init, img_keys, img_vals = enc_img(feats_all, params, norm_img)

    # embedder (glue gather), time-major: (T, B3p, Dtp)
    tok_embs_tm = params["emb"][texts_all.T]
    full_embs_tm = jnp.concatenate([img_init[None], tok_embs_tm], axis=0)

    T = L + 1
    Tc = min(T, 8)                   # time chunk streamed through VMEM
    T_pad = _round_up(T, Tc)
    if T_pad > T:
        full_embs_tm = jnp.pad(full_embs_tm, ((0, T_pad - T), (0, 0), (0, 0)))
    x_flat = full_embs_tm.reshape(T_pad * B3p, -1)

    nl = len(params["lstm"])
    h = x_flat
    feat_flat = gate_flat = None
    for li, lp in enumerate(params["lstm"]):
        if li == nl - 1:   # last layer: fuse calc_gate + gating mix
            feat_flat, gate_flat = lstm_layer(
                h, lp, img_keys, img_vals,
                t_pad=T_pad, tc=Tc, bp=B3p, fuse_gate=True, use_gate=use_gate)
        else:
            h = lstm_layer(h, lp, None, None,
                           t_pad=T_pad, tc=Tc, bp=B3p,
                           fuse_gate=False, use_gate=use_gate)

    # seq_dropout: args.dropout_seq = 0.0 here -> identity.
    M = L * B3p
    pred_map = pred_head(feat_flat[:M], params["w_predT"], params["b_pred"])
    gate_vec = gate_flat[:M, 0]                                        # (M,)

    # reshape_for_loss: one gather per tensor per branch (static indices)
    outs = []
    branches = [(pair_texts, pair_spans, pair_lengths),
                (obj1_texts, obj1_spans, obj1_lengths),
                (obj2_texts, obj2_spans, obj2_lengths)]
    for br, (texts, spans, lengths) in enumerate(branches):
        rows_tm, rows_bl = _build_indices(lengths, br, B, L, B3p)
        preds = jnp.take(pred_map, rows_tm, axis=0)[:, :V]
        gts = jnp.take(texts.reshape(-1), rows_bl, axis=0)
        gate_preds = jnp.take(gate_vec, rows_tm, axis=0)
        gate_label = jnp.take(spans.reshape(-1), rows_bl, axis=0).astype(jnp.float32)
        outs += [preds, gts, gate_preds, gate_label]
    return tuple(outs)


# ---------------------------------------------------------------------------
# Deterministic parameter init (shapes from Model.__init__); weights stored
# pre-transposed, zero-padded to 128-lane-aligned dims, and cast to bf16.
# ---------------------------------------------------------------------------
def init_params(key, vocab, dim_tok, dim_img, dim_hid, nlayer):
    ks = jax.random.split(key, 8 + 2 * nlayer)
    Hp = _round_up(dim_hid, 128)
    Dtp = _round_up(dim_tok, 128)
    Vp = _round_up(vocab, 128)
    TV = min(Vp, 1024)
    Vp = _round_up(Vp, TV)

    def lin(k, out_d, in_d):
        kw, kb = jax.random.split(k)
        bound = 1.0 / (in_d ** 0.5)
        w = jax.random.uniform(kw, (out_d, in_d), jnp.float32, -bound, bound)
        b = jax.random.uniform(kb, (out_d,), jnp.float32, -bound, bound)
        return w, b

    emb = jax.random.normal(ks[0], (vocab, dim_tok), jnp.float32).at[0].set(0.0)
    emb_p = jnp.zeros((vocab, Dtp), jnp.float32).at[:, :dim_tok].set(emb)

    wi, bi = lin(ks[1], dim_tok, dim_img)          # img_input_encoder
    wk, bk = lin(ks[2], dim_hid, dim_tok)          # img_key_encoder
    wv, bv = lin(ks[3], dim_hid, dim_tok)          # img_val_encoder
    w_pred, b_pred = lin(ks[4], vocab, dim_hid)    # pred_linear

    wiT = jnp.zeros((dim_img, Dtp), jnp.float32).at[:, :dim_tok].set(wi.T)
    bi_p = jnp.zeros((1, Dtp), jnp.float32).at[0, :dim_tok].set(bi)

    wkvT = jnp.zeros((Dtp, 2 * Hp), jnp.float32)
    wkvT = wkvT.at[:dim_tok, :dim_hid].set(wk.T)
    wkvT = wkvT.at[:dim_tok, Hp:Hp + dim_hid].set(wv.T)
    bkv = jnp.zeros((1, 2 * Hp), jnp.float32)
    bkv = bkv.at[0, :dim_hid].set(bk).at[0, Hp:Hp + dim_hid].set(bv)

    w_predT = jnp.zeros((Hp, Vp), jnp.float32).at[:dim_hid, :vocab].set(w_pred.T)
    b_pred_p = jnp.zeros((1, Vp), jnp.float32).at[0, :vocab].set(b_pred)

    lstm = []
    for l in range(nlayer):
        in_d = dim_tok if l == 0 else dim_hid
        in_p = Dtp if l == 0 else Hp
        w_ih, b_ih = lin(ks[5 + 2 * l], 4 * dim_hid, in_d)
        w_hh, b_hh = lin(ks[6 + 2 * l], 4 * dim_hid, dim_hid)
        b = b_ih + b_hh
        wihT = jnp.zeros((in_p, 4 * Hp), jnp.float32)
        whhT = jnp.zeros((Hp, 4 * Hp), jnp.float32)
        bfull = jnp.zeros((1, 4 * Hp), jnp.float32)
        for g in range(4):  # i, f, g, o blocks, each placed at a 128-aligned slot
            src = slice(g * dim_hid, (g + 1) * dim_hid)
            dst = slice(g * Hp, g * Hp + dim_hid)
            wihT = wihT.at[:in_d, dst].set(w_ih[src].T)
            whhT = whhT.at[:dim_hid, dst].set(w_hh[src].T)
            bfull = bfull.at[0, dst].set(b[src])
        lstm.append({"w_ihT": wihT.astype(jnp.bfloat16),
                     "w_hhT": whhT.astype(jnp.bfloat16),
                     "b": bfull})

    return {"emb": emb_p,
            "wiT": wiT.astype(jnp.bfloat16), "bi": bi_p,
            "wkvT": wkvT.astype(jnp.bfloat16), "bkv": bkv,
            "w_predT": w_predT.astype(jnp.bfloat16), "b_pred": b_pred_p,
            "vocab": vocab, "hp": Hp, "dtp": Dtp, "lstm": lstm}


if __name__ == "__main__":
    B, L = 2, 8
    dim_img, dim_tok, dim_hid = 32, 16, 32
    vocab, nlayer = 40, 1

    key = jax.random.PRNGKey(0)
    kp, kd = jax.random.split(key)
    params = init_params(kp, vocab, dim_tok, dim_img, dim_hid, nlayer)

    dks = jax.random.split(kd, 9)

    def texts_and_spans(k):
        kt, ks_ = jax.random.split(k)
        texts = jax.random.randint(kt, (B, L), 1, vocab, dtype=jnp.int32)
        spans = jax.random.randint(ks_, (B, L), 0, 2, dtype=jnp.int32)
        return texts, spans

    pair_texts, pair_spans = texts_and_spans(dks[0])
    obj1_texts, obj1_spans = texts_and_spans(dks[1])
    obj2_texts, obj2_spans = texts_and_spans(dks[2])
    pair_feats = jax.random.normal(dks[3], (B, 1, dim_img), jnp.float32)
    obj1_feats = jax.random.normal(dks[4], (B, 1, dim_img), jnp.float32)
    obj2_feats = jax.random.normal(dks[5], (B, 1, dim_img), jnp.float32)
    pair_lengths, obj1_lengths, obj2_lengths = [8, 5], [6, 8], [7, 4]

    batch = (pair_texts, pair_lengths, pair_spans,
             obj1_texts, obj1_lengths, obj1_spans,
             obj2_texts, obj2_lengths, obj2_spans,
             pair_feats, obj1_feats, obj2_feats)

    outs = model_forward_train(params, batch)
    outs = jax.block_until_ready(outs)

    # sanity: (sum(slen), vocab) / (sum(slen),) shapes per branch
    assert outs[0].shape == (sum(pair_lengths), vocab)
    assert outs[1].shape == (sum(pair_lengths),)
    assert outs[2].shape == (sum(pair_lengths),)
    assert outs[3].shape == (sum(pair_lengths),)
    assert outs[4].shape == (sum(obj1_lengths), vocab)
    assert outs[8].shape == (sum(obj2_lengths), vocab)
    print("KERNEL_OK")
</pallas_src>

<mosaic_0001>
module attributes {stable_mosaic.version = 11 : i64} {
  func.func @_enc_img_kernel(%arg0: i32, %arg1: memref<16x32xf32, #tpu.memory_space<vmem>>, %arg2: memref<32x128xbf16, #tpu.memory_space<vmem>>, %arg3: memref<1x128xf32, #tpu.memory_space<vmem>>, %arg4: memref<128x256xbf16, #tpu.memory_space<vmem>>, %arg5: memref<1x256xf32, #tpu.memory_space<vmem>>, %arg6: memref<16x128xf32, #tpu.memory_space<vmem>>, %arg7: memref<16x128xf32, #tpu.memory_space<vmem>>, %arg8: memref<16x128xf32, #tpu.memory_space<vmem>>) attributes {dimension_semantics = [#tpu.dimension_semantics<arbitrary>], iteration_bounds = array<i64: 1>, scalar_prefetch = 0 : i64, scratch_operands = 0 : i64, tpu.core_type = #tpu.core_type<tc>, window_params = [{pipeline_mode = #tpu.pipeline_mode<synchronous>, transform_indices = @transform_0, window_bounds = array<i64: 16, 32>}, {pipeline_mode = #tpu.pipeline_mode<synchronous>, transform_indices = @transform_1, window_bounds = array<i64: 32, 128>}, {pipeline_mode = #tpu.pipeline_mode<synchronous>, transform_indices = @transform_2, window_bounds = array<i64: 1, 128>}, {pipeline_mode = #tpu.pipeline_mode<synchronous>, transform_indices = @transform_3, window_bounds = array<i64: 128, 256>}, {pipeline_mode = #tpu.pipeline_mode<synchronous>, transform_indices = @transform_4, window_bounds = array<i64: 1, 256>}, {pipeline_mode = #tpu.pipeline_mode<synchronous>, transform_indices = @transform_5, window_bounds = array<i64: 16, 128>}, {pipeline_mode = #tpu.pipeline_mode<synchronous>, transform_indices = @transform_6, window_bounds = array<i64: 16, 128>}, {pipeline_mode = #tpu.pipeline_mode<synchronous>, transform_indices = @transform_7, window_bounds = array<i64: 16, 128>}]} {
    %c0 = arith.constant 0 : index
    %c0_0 = arith.constant 0 : index
    %0 = vector.load %arg1[%c0, %c0_0] : memref<16x32xf32, #tpu.memory_space<vmem>>, vector<16x32xf32>
    %1 = arith.truncf %0 : vector<16x32xf32> to vector<16x32xbf16>
    %c0_1 = arith.constant 0 : index
    %c0_2 = arith.constant 0 : index
    %2 = vector.load %arg2[%c0_1, %c0_2] : memref<32x128xbf16, #tpu.memory_space<vmem>>, vector<32x128xbf16>
    %cst = arith.constant dense<0.000000e+00> : vector<16x128xf32>
    %3 = tpu.matmul %1, %2, %cst {dimension_numbers = #tpu.dot_dimension_numbers<[1], [0], [0], [1], [0, 0, 1, 1], [], []>} : vector<16x32xbf16>, vector<32x128xbf16>, vector<16x128xf32> -> vector<16x128xf32>
    %c0_3 = arith.constant 0 : index
    %c0_4 = arith.constant 0 : index
    %4 = vector.load %arg3[%c0_3, %c0_4] : memref<1x128xf32, #tpu.memory_space<vmem>>, vector<1x128xf32>
    %5 = vector.broadcast %4 : vector<1x128xf32> to vector<16x128xf32>
    %6 = arith.addf %3, %5 : vector<16x128xf32>
    %7 = arith.truncf %6 : vector<16x128xf32> to vector<16x128xbf16>
    %c0_5 = arith.constant 0 : index
    %c0_6 = arith.constant 0 : index
    %8 = vector.load %arg4[%c0_5, %c0_6] : memref<128x256xbf16, #tpu.memory_space<vmem>>, vector<128x256xbf16>
    %cst_7 = arith.constant dense<0.000000e+00> : vector<16x256xf32>
    %9 = tpu.matmul %7, %8, %cst_7 {dimension_numbers = #tpu.dot_dimension_numbers<[1], [0], [0], [1], [0, 0, 1, 1], [], []>} : vector<16x128xbf16>, vector<128x256xbf16>, vector<16x256xf32> -> vector<16x256xf32>
    %c0_8 = arith.constant 0 : index
    %c0_9 = arith.constant 0 : index
    %10 = vector.load %arg5[%c0_8, %c0_9] : memref<1x256xf32, #tpu.memory_space<vmem>>, vector<1x256xf32>
    %11 = vector.broadcast %10 : vector<1x256xf32> to vector<16x256xf32>
    %12 = arith.addf %9, %11 : vector<16x256xf32>
    %13 = vector.extract_strided_slice %12 {offsets = [0, 0], sizes = [16, 128], strides = [1, 1]} : vector<16x256xf32> to vector<16x128xf32>
    %14 = math.tanh %13 : vector<16x128xf32>
    %15 = vector.extract_strided_slice %12 {offsets = [0, 128], sizes = [16, 128], strides = [1, 1]} : vector<16x256xf32> to vector<16x128xf32>
    %16 = arith.mulf %6, %6 : vector<16x128xf32>
    %cst_10 = arith.constant dense<0.000000e+00> : vector<16xf32>
    %17 = vector.multi_reduction <add>, %16, %cst_10 [1] : vector<16x128xf32> to vector<16xf32>
    %18 = vector.shape_cast %17 : vector<16xf32> to vector<16x1xf32>
    %19 = math.sqrt %18 : vector<16x1xf32>
    %cst_11 = arith.constant 9.99999996E-13 : f32
    %20 = vector.broadcast %cst_11 : f32 to vector<16x1xf32>
    %21 = arith.maximumf %19, %20 : vector<16x1xf32>
    %22 = vector.broadcast %21 : vector<16x1xf32> to vector<16x128xf32>
    %23 = arith.divf %6, %22 : vector<16x128xf32>
    %24 = arith.mulf %15, %15 : vector<16x128xf32>
    %cst_12 = arith.constant dense<0.000000e+00> : vector<16xf32>
    %25 = vector.multi_reduction <add>, %24, %cst_12 [1] : vector<16x128xf32> to vector<16xf32>
    %26 = vector.shape_cast %25 : vector<16xf32> to vector<16x1xf32>
    %27 = math.sqrt %26 : vector<16x1xf32>
    %cst_13 = arith.constant 9.99999996E-13 : f32
    %28 = vector.broadcast %cst_13 : f32 to vector<16x1xf32>
    %29 = arith.maximumf %27, %28 : vector<16x1xf32>
    %30 = vector.broadcast %29 : vector<16x1xf32> to vector<16x128xf32>
    %31 = arith.divf %15, %30 : vector<16x128xf32>
    %c0_14 = arith.constant 0 : index
    %c0_15 = arith.constant 0 : index
    %32 = vector.load %arg6[%c0_14, %c0_15] : memref<16x128xf32, #tpu.memory_space<vmem>>, vector<16x128xf32>
    tpu.vector_store %arg6[%c0_14, %c0_15], %23 {strides = array<i32>} : memref<16x128xf32, #tpu.memory_space<vmem>>, vector<16x128xf32>,
    %c0_16 = arith.constant 0 : index
    %c0_17 = arith.constant 0 : index
    %33 = vector.load %arg7[%c0_16, %c0_17] : memref<16x128xf32, #tpu.memory_space<vmem>>, vector<16x128xf32>
    tpu.vector_store %arg7[%c0_16, %c0_17], %14 {strides = array<i32>} : memref<16x128xf32, #tpu.memory_space<vmem>>, vector<16x128xf32>,
    %c0_18 = arith.constant 0 : index
    %c0_19 = arith.constant 0 : index
    %34 = vector.load %arg8[%c0_18, %c0_19] : memref<16x128xf32, #tpu.memory_space<vmem>>, vector<16x128xf32>
    tpu.vector_store %arg8[%c0_18, %c0_19], %31 {strides = array<i32>} : memref<16x128xf32, #tpu.memory_space<vmem>>, vector<16x128xf32>,
    return
  }
  func.func @transform_0(%arg0: i32) -> (i32, i32) {
    %c0_i32 = arith.constant 0 : i32
    %c0_i32_0 = arith.constant 0 : i32
    %c0_i32_1 = arith.constant 0 : i32
    return %c0_i32, %c0_i32_0 : i32, i32
  }
  func.func @transform_1(%arg0: i32) -> (i32, i32) {
    %c0_i32 = arith.constant 0 : i32
    %c0_i32_0 = arith.constant 0 : i32
    %c0_i32_1 = arith.constant 0 : i32
    return %c0_i32, %c0_i32_0 : i32, i32
  }
  func.func @transform_2(%arg0: i32) -> (i32, i32) {
    %c0_i32 = arith.constant 0 : i32
    %c0_i32_0 = arith.constant 0 : i32
    %c0_i32_1 = arith.constant 0 : i32
    return %c0_i32, %c0_i32_0 : i32, i32
  }
  func.func @transform_3(%arg0: i32) -> (i32, i32) {
    %c0_i32 = arith.constant 0 : i32
    %c0_i32_0 = arith.constant 0 : i32
    %c0_i32_1 = arith.constant 0 : i32
    return %c0_i32, %c0_i32_0 : i32, i32
  }
  func.func @transform_4(%arg0: i32) -> (i32, i32) {
    %c0_i32 = arith.constant 0 : i32
    %c0_i32_0 = arith.constant 0 : i32
    %c0_i32_1 = arith.constant 0 : i32
    return %c0_i32, %c0_i32_0 : i32, i32
  }
  func.func @transform_5(%arg0: i32) -> (i32, i32) {
    %c0_i32 = arith.constant 0 : i32
    %c0_i32_0 = arith.constant 0 : i32
    %c0_i32_1 = arith.constant 0 : i32
    return %c0_i32, %c0_i32_0 : i32, i32
  }
  func.func @transform_6(%arg0: i32) -> (i32, i32) {
    %c0_i32 = arith.constant 0 : i32
    %c0_i32_0 = arith.constant 0 : i32
    %c0_i32_1 = arith.constant 0 : i32
    return %c0_i32, %c0_i32_0 : i32, i32
  }
  func.func @transform_7(%arg0: i32) -> (i32, i32) {
    %c0_i32 = arith.constant 0 : i32
    %c0_i32_0 = arith.constant 0 : i32
    %c0_i32_1 = arith.constant 0 : i32
    return %c0_i32, %c0_i32_0 : i32, i32
  }
}

</mosaic_0001>

<bundles_post_ra>
// kernel: tpu_custom_call.1
= control target key start
LH: loop header
LB: loop body
LE: loop exit
PB: predicated region body
PF: predicated region fallthrough
CT: control target
= control target key end

     0   :  { %13 = vsyncpa [#allocation3], 0  ;;  %s709_s0 = inlined_call_operand.hbm [shape: f32[16,32], index: 0, kind: input, shape index: {}]   ;;  %s710_s1 = inlined_call_operand.hbm [shape: bf16[32,128], index: 1, kind: input, shape index: {}]   ;;  %s711_s2 = inlined_call_operand.vmem [shape: f32[1,128], index: 2, kind: input, shape index: {}]   ;;  %s712_s3 = inlined_call_operand.hbm [shape: bf16[128,256], index: 3, kind: input, shape index: {}]   ;;  %s713_s4 = inlined_call_operand.vmem [shape: f32[1,256], index: 4, kind: input, shape index: {}]   ;;  %s714_s5 = inlined_call_operand.hbm [shape: f32[16,128], index: 5, kind: output, shape index: {0}]   ;;  %s715_s6 = inlined_call_operand.hbm [shape: f32[16,128], index: 6, kind: output, shape index: {1}]   ;;  %s716_s7 = inlined_call_operand.hbm [shape: f32[16,128], index: 7, kind: output, shape index: {2}]  }
   0x1   :  { %14 = vsyncpa [#allocation6], 0 }
   0x2   :  { %15 = vsyncpa [#allocation4], 0 }
   0x3   :  { %16 = vsyncpa [#allocation10], 0  ;;  %s617_s24 = smov [#allocation5]  }
   0x4   :  { %s34_s25 = sshll.u32 %s617_s24, 4  ;;  %s35_s25 = int_to_ptr.vmem [resolvable:$true] %s34_s25 }
   0x5   :  { %s497_s26 = scalar_lea.vmem %s35_s25, 256  ;;  %p502_p1 = scmp.lt.s32.totalorder %s35_s25, %s35_s25 }
   0x6   :  { %p498_p0 = scmp.ne.s32.totalorder %s35_s25, %s497_s26  ;;  %p503_p2 = scmp.lt.s32.totalorder %s497_s26, %s497_s26 }
   0x8   :  { %p504_p3 = por %p503_p2, %p502_p1 }
   0xa   :  { %p505_p4 = pnand %p504_p3, %p498_p0 }
   0xc   :  { %508 = shalt.err (!%p505_p4)
}
   0xd   :  { %s618_s27 = smov 64   ;;  %s619_s28 = smov 4  }
   0xe   :  { %40 = dma.hbm_to_vmem [thread:$0]  %s710_s1, 256, %s35_s25, [#allocation6], %s618_s27, %s618_s27, %s619_s28  }
   0xf   :  { %s620_s8 = smov [#allocation2]  }
  0x10   :  { %s22_s9 = sshll.u32 %s620_s8, 4  ;;  %s23_s9 = int_to_ptr.vmem [resolvable:$true] %s22_s9 }
  0x11   :  { %s517_s10 = scalar_lea.vmem %s23_s9, 256  ;;  %p522_p6 = scmp.lt.s32.totalorder %s23_s9, %s23_s9 }
  0x12   :  { %p518_p5 = scmp.ne.s32.totalorder %s23_s9, %s517_s10  ;;  %p523_p7 = scmp.lt.s32.totalorder %s517_s10, %s517_s10 }
  0x14   :  { %p524_p8 = por %p523_p7, %p522_p6 }
  0x16   :  { %p525_p9 = pnand %p524_p8, %p518_p5 }
  0x18   :  { %528 = shalt.err (!%p525_p9)
}
  0x19   :  { %s621_s11 = smov 128   ;;  %s622_s12 = smov 8  }
  0x1a   :  { %28 = dma.hbm_to_vmem [thread:$0]  %s709_s0, 256, %s23_s9, [#allocation3], %s621_s11, %s621_s11, %s622_s12  }
  0x1b   :  { %s623_s1 = smov [#allocation7]  }
  0x1c   :  { %s48_s15 = sshll.u32 %s623_s1, 4  ;;  %s49_s15 = int_to_ptr.vmem [resolvable:$true] %s48_s15 }
  0x1d   :  { %s537_s16 = scalar_lea.vmem %s49_s15, 2048  ;;  %p542_p11 = scmp.lt.s32.totalorder %s49_s15, %s49_s15 }
  0x1e   :  { %p538_p10 = scmp.ne.s32.totalorder %s49_s15, %s537_s16  ;;  %p543_p12 = scmp.lt.s32.totalorder %s537_s16, %s537_s16 }
  0x20   :  { %p544_p13 = por %p543_p12, %p542_p11 }
  0x22   :  { %p545_p0 = pnand %p544_p13, %p538_p10 }
  0x24   :  { %548 = shalt.err (!%p545_p0)
}
  0x25   :  { %54 = dma.hbm_to_vmem [thread:$0]  %s712_s3, 2048, %s49_s15, [#allocation6], %s621_s11, %s621_s11, %s622_s12  }
  0x26   :  { %609 = dma.done.wait [#allocation3], 256  }
  0x27   :  { %610 = vsyncadd [#allocation3], 4294967040 }
  0x28   :  { %611 = dma.done.wait [#allocation6], 2304  }
  0x29   :  { %612 = vsyncadd [#allocation6], 4294964992  ;;  %v624_v0 = vmov 0.0   ;;  %vm625_vm0 = vmmov 0   ;;  %v443_v1 = vld [vmem:[#allocation5 + $0x8] sm:$0xff]   ;;  %v444_v2 = vld [vmem:[#allocation5] sm:$0xff]   ;;  %v157_v51 = vlaneseq }
  0x2a   :  { %422 = vmatprep.subr.bf16.mxu0 %v624_v0  ;;  %426 = vmatprep.mubr.msk.bf16.mxu0 %vm625_vm0, %v624_v0  ;;  %v67_v3 = vld [vmem:[#allocation2] sm:$0xff]  ;;  %v68_v4 = vld [vmem:[#allocation2 + $0x8] sm:$0xff]  ;;  %v445_v5 = vld [vmem:[#allocation7 + $0x74] ss:$8 sps:$4 sm:$0xff]   ;;  %vm93_vm1 = vcmask 261120   ;;  %v626_v22 = vmov 0  }
  0x2b   :  { %423 = vmatpush3.bf16.msra.mxu0 %v443_v1  ;;  %v447_v6 = vld [vmem:[#allocation7 + $0x70] ss:$8 sps:$4 sm:$0xff]   ;;  %v448_v7 = vld [vmem:[#allocation7 + $0x64] ss:$8 sps:$4 sm:$0xff]   ;;  %v69_v8 = vpack.c.bf16 %v68_v4, %v67_v3  ;;  %247 = vmatprep.subr.bf16.mxu1 %v445_v5  ;;  %v450_v9 = vld [vmem:[#allocation7 + $0x60] ss:$8 sps:$4 sm:$0xff]  }
  0x2c   :  { %424 = vmatprep.subr.bf16.mxu0 %v624_v0  ;;  %248 = vmatpush1.bf16.msra.mxu1 %v447_v6  ;;  %v451_v10 = vld [vmem:[#allocation7 + $0x54] ss:$8 sps:$4 sm:$0xff]   ;;  %v453_v11 = vld [vmem:[#allocation7 + $0x50] ss:$8 sps:$4 sm:$0xff]   ;;  %v454_v12 = vld [vmem:[#allocation7 + $0x44] ss:$8 sps:$4 sm:$0xff]  }
  0x2d   :  { %249 = vmatprep.subr.bf16.mxu1 %v448_v7  ;;  %v456_v13 = vld [vmem:[#allocation7 + $0x40] ss:$8 sps:$4 sm:$0xff]   ;;  %v457_v14 = vld [vmem:[#allocation7 + $0x34] ss:$8 sps:$4 sm:$0xff]   ;;  %v459_v15 = vld [vmem:[#allocation7 + $0x30] ss:$8 sps:$4 sm:$0xff]   ;;  %279 = vmatprep.mubr.bf16.mxu1 %v626_v22 }
  0x2e   :  { %v460_v16 = vld [vmem:[#allocation7 + $0x24] ss:$8 sps:$4 sm:$0xff]   ;;  %v462_v17 = vld [vmem:[#allocation7 + $0x20] ss:$8 sps:$4 sm:$0xff]   ;;  %v463_v18 = vld [vmem:[#allocation7 + $0x14] ss:$8 sps:$4 sm:$0xff]  }
  0x2f   :  { %425 = vmatpush3.bf16.msra.mxu0 %v444_v2  ;;  %v465_v19 = vld [vmem:[#allocation7 + $0x10] ss:$8 sps:$4 sm:$0xff]   ;;  %v466_v20 = vld [vmem:[#allocation7 + $0x4] ss:$8 sps:$4 sm:$0xff]   ;;  %v468_v21 = vld [vmem:[#allocation7] ss:$8 sps:$4 sm:$0xff]  }
  0x30   :  { %250 = vmatpush1.bf16.msra.mxu1 %v450_v9  ;;  %v399_v23 = vld [vmem:[%s711_s2] ss:$0 sm:$0xff]  ;;  %v158_v52 = vshrl.u32 %v157_v51, 7  ;;  %s628_s21 = smov [#allocation8]  }
  0x31   :  { %251 = vmatprep.subr.bf16.mxu1 %v451_v10  ;;  %v155_v54 = vld [vmem:[%s713_s4] sm:$0x3]  ;;  %s627_s4 = smov [#allocation9]   ;;  %s355_s22 = sshll.u32 %s628_s21, 4  ;;  %s356_s22 = int_to_ptr.vmem [resolvable:$true] %s355_s22 }
  0x32   :  { %427 = vmatmul.mubr.msk.bf16.vlgmr.msra.gmra.mxu0 %vm93_vm1, %v69_v8  ;;  %v159_v53 = vsub.s32 0, %v158_v52  ;;  %v163_v55 = vsub.s32 1, %v158_v52  ;;  %s367_s20 = sshll.u32 %s627_s4, 4  ;;  %s368_s20 = int_to_ptr.vmem [resolvable:$true] %s367_s20 }
  0x33   :  { %s549_s23 = scalar_lea.vmem %s368_s20, 256  ;;  %p554_p2 = scmp.lt.s32.totalorder %s368_s20, %s368_s20 }
  0x34   :  { %252 = vmatpush1.bf16.msra.mxu1 %v453_v11  ;;  %v160_v56 = vrot.slane %v155_v54, %v159_v53  ;;  %v164_v57 = vrot.slane %v155_v54, %v163_v55  ;;  %p550_p1 = scmp.ne.s32.totalorder %s368_s20, %s549_s23  ;;  %p555_p3 = scmp.lt.s32.totalorder %s549_s23, %s549_s23 }
  0x35   :  { %253 = vmatprep.subr.bf16.mxu1 %v454_v12 }
  0x36   :  { %p556_p4 = por %p555_p3, %p554_p2 }
  0x38   :  { %254 = vmatpush1.bf16.msra.mxu1 %v456_v13  ;;  %p557_p5 = pnand %p556_p4, %p550_p1 }
  0x39   :  { %255 = vmatprep.subr.bf16.mxu1 %v457_v14 }
  0x3c   :  { %256 = vmatpush1.bf16.msra.mxu1 %v459_v15 }
  0x3d   :  { %257 = vmatprep.subr.bf16.mxu1 %v460_v16 }
  0x40   :  { %258 = vmatpush1.bf16.msra.mxu1 %v462_v17 }
  0x41   :  { %259 = vmatprep.subr.bf16.mxu1 %v463_v18 }
  0x44   :  { %260 = vmatpush1.bf16.msra.mxu1 %v465_v19 }
  0x45   :  { %261 = vmatprep.subr.bf16.mxu1 %v466_v20 }
  0x48   :  { %262 = vmatpush1.bf16.msra.mxu1 %v468_v21 }
  0xf2   :  { %v131_v24 = vpop.f32.mrf.mxu0 }
  0xf3   :  { %v132_v25 = vadd.f32 %v399_v23, %v131_v24 }
  0xf4   :  { %v428_v26 = vpop.f32.mrf.mxu0 }
  0xf5   :  { %v292_v27 = vmul.f32 %v132_v25, %v132_v25 }
  0xf6   :  { %v134_v28 = vpop.f32.mrf.mxu0 }
  0xf7   :  { %v135_v29 = vadd.f32 %v399_v23, %v134_v28  ;;  %294 = vadd.xlane.f32.xlu0 %v292_v27 }
  0xf8   :  { %v429_v30 = vpop.f32.mrf.mxu0 }
  0xf9   :  { %v293_v31 = vmul.f32 %v135_v29, %v135_v29  ;;  %v138_v32 = vpack.c.bf16 %v135_v29, %v132_v25 }
  0xfb   :  { %296 = vadd.xlane.f32.xlu0 %v293_v31  ;;  %280 = vmatmul.mubr.bf16.vlgmr.msra.gmra.mxu1 %v138_v32 }
 0x180   :  { %v295_v33 = vpop.xlane.xlu0 %294 }
 0x181   :  { %469 = vrsqrt.f32 %v295_v33  ;;  %vm300_vm2 = vcmp.eq.f32.partialorder %v295_v33, inf  ;;  %v303_v37 = vand.u32 2147483648, %v295_v33  ;;  %vm302_vm3 = vcmp.eq.f32.partialorder %v295_v33, 0.0 }
 0x184   :  { %v297_v34 = vpop.xlane.xlu0 %296 }
 0x185   :  { %471 = vrsqrt.f32 %v297_v34  ;;  %vm307_vm4 = vcmp.eq.f32.partialorder %v297_v34, inf  ;;  %v310_v43 = vand.u32 2147483648, %v297_v34  ;;  %vm309_vm5 = vcmp.eq.f32.partialorder %v297_v34, 0.0 }
 0x18e   :  { %v470_v35 = vpop.eup %469 }
 0x18f   :  { %v299_v36 = vmul.f32 %v470_v35, %v295_v33 }
 0x191   :  { %v301_v38 = vsel %vm300_vm2, %v295_v33, %v299_v36 }
 0x192   :  { %v472_v39 = vpop.eup %471  ;;  %v304_v40 = vsel %vm302_vm3, %v303_v37, %v301_v38 }
 0x193   :  { %v312_v41 = vmax.f32 %v304_v40, 1e-12  ;;  %v306_v42 = vmul.f32 %v472_v39, %v297_v34 }
 0x195   :  { %473 = vrcp.f32 %v312_v41  ;;  %v308_v44 = vsel %vm307_vm4, %v297_v34, %v306_v42 }
 0x196   :  { %v311_v45 = vsel %vm309_vm5, %v310_v43, %v308_v44 }
 0x197   :  { %v313_v46 = vmax.f32 %v311_v45, 1e-12 }
 0x199   :  { %475 = vrcp.f32 %v313_v46 }
 0x1a2   :  { %v474_v47 = vpop.eup %473 }
 0x1a3   :  { %v315_v48 = vmul.f32 %v474_v47, %v132_v25 }
 0x1a5   :  { %344 = vst [vmem:[#allocation8] sm:$0xff] %v315_v48 }
 0x1a6   :  { %v476_v49 = vpop.eup %475 }
 0x1a7   :  { %v317_v50 = vmul.f32 %v476_v49, %v135_v29 }
 0x1a9   :  { %345 = vst [vmem:[#allocation8 + $0x8] sm:$0xff] %v317_v50 }
 0x1bb   :  { %v281_v58 = vpop.f32.mrf.mxu1 }
 0x1bc   :  { %v282_v59 = vadd.f32 %v281_v58, %v160_v56 }
 0x1bd   :  { %v283_v60 = vpop.f32.mrf.mxu1 }
 0x1be   :  { %477 = vtanh.f32 %v282_v59  ;;  %v284_v61 = vadd.f32 %v283_v60, %v164_v57 }
 0x1bf   :  { %v285_v62 = vpop.f32.mrf.mxu1 }
 0x1c0   :  { %v286_v63 = vadd.f32 %v285_v62, %v160_v56  ;;  %v318_v0 = vmul.f32 %v284_v61, %v284_v61 }
 0x1c1   :  { %v287_v1 = vpop.f32.mrf.mxu1 }
 0x1c2   :  { %479 = vtanh.f32 %v286_v63  ;;  %v288_v2 = vadd.f32 %v287_v1, %v164_v57  ;;  %320 = vadd.xlane.f32.xlu1 %v318_v0 }
 0x1c4   :  { %v319_v3 = vmul.f32 %v288_v2, %v288_v2 }
 0x1c6   :  { %322 = vadd.xlane.f32.xlu1 %v319_v3 }
 0x1cb   :  { %v478_v4 = vpop.eup %477 }
 0x1cc   :  { %346 = vst [vmem:[#allocation9] sm:$0xff] %v478_v4 }
 0x1cf   :  { %v480_v5 = vpop.eup %479 }
 0x1d0   :  { %347 = vst [vmem:[#allocation9 + $0x8] sm:$0xff] %v480_v5 }
 0x1d1   :  { %560 = shalt.err (!%p557_p5)
}
 0x1d2   :  { %373 = dma.vmem_to_hbm [thread:$0]  %s368_s20, 256, %s715_s6, [#allocation10], %s621_s11, %s621_s11, %s622_s12  }
 0x1d3   :  { %s569_s26 = scalar_lea.vmem %s356_s22, 256  ;;  %p574_p7 = scmp.lt.s32.totalorder %s356_s22, %s356_s22 }
 0x1d4   :  { %p570_p6 = scmp.ne.s32.totalorder %s356_s22, %s569_s26  ;;  %p575_p8 = scmp.lt.s32.totalorder %s569_s26, %s569_s26 }
 0x1d6   :  { %p576_p9 = por %p575_p8, %p574_p7 }
 0x1d8   :  { %p577_p10 = pnand %p576_p9, %p570_p6 }
 0x1da   :  { %580 = shalt.err (!%p577_p10)
}
 0x1db   :  { %361 = dma.vmem_to_hbm [thread:$0]  %s356_s22, 256, %s714_s5, [#allocation4], %s621_s11, %s621_s11, %s622_s12  }
 0x1dc   :  { %s629_s5 = smov [#allocation11]  }
 0x1dd   :  { %s379_s6 = sshll.u32 %s629_s5, 4  ;;  %s380_s6 = int_to_ptr.vmem [resolvable:$true] %s379_s6 }
 0x1de   :  { %s589_s29 = scalar_lea.vmem %s380_s6, 256  ;;  %p594_p12 = scmp.lt.s32.totalorder %s380_s6, %s380_s6 }
 0x1df   :  { %p590_p11 = scmp.ne.s32.totalorder %s380_s6, %s589_s29  ;;  %p595_p13 = scmp.lt.s32.totalorder %s589_s29, %s589_s29 }
 0x1e1   :  { %p596_p0 = por %p595_p13, %p594_p12 }
 0x1e3   :  { %p597_p1 = pnand %p596_p0, %p590_p11 }
 0x24b   :  { %v321_v6 = vpop.xlane.xlu1 %320 }
 0x24c   :  { %481 = vrsqrt.f32 %v321_v6  ;;  %vm326_vm6 = vcmp.eq.f32.partialorder %v321_v6, inf  ;;  %v329_v10 = vand.u32 2147483648, %v321_v6  ;;  %vm328_vm7 = vcmp.eq.f32.partialorder %v321_v6, 0.0 }
 0x24f   :  { %v323_v7 = vpop.xlane.xlu1 %322 }
 0x250   :  { %483 = vrsqrt.f32 %v323_v7  ;;  %vm333_vm8 = vcmp.eq.f32.partialorder %v323_v7, inf  ;;  %v336_v16 = vand.u32 2147483648, %v323_v7  ;;  %vm335_vm9 = vcmp.eq.f32.partialorder %v323_v7, 0.0 }
 0x259   :  { %v482_v8 = vpop.eup %481 }
 0x25a   :  { %v325_v9 = vmul.f32 %v482_v8, %v321_v6 }
 0x25c   :  { %v327_v11 = vsel %vm326_vm6, %v321_v6, %v325_v9 }
 0x25d   :  { %v484_v12 = vpop.eup %483  ;;  %v330_v13 = vsel %vm328_vm7, %v329_v10, %v327_v11 }
 0x25e   :  { %v338_v14 = vmax.f32 %v330_v13, 1e-12  ;;  %v332_v15 = vmul.f32 %v484_v12, %v323_v7 }
 0x260   :  { %485 = vrcp.f32 %v338_v14  ;;  %v334_v17 = vsel %vm333_vm8, %v323_v7, %v332_v15 }
 0x261   :  { %v337_v18 = vsel %vm335_vm9, %v336_v16, %v334_v17 }
 0x262   :  { %v339_v19 = vmax.f32 %v337_v18, 1e-12 }
 0x264   :  { %487 = vrcp.f32 %v339_v19 }
 0x26d   :  { %v486_v20 = vpop.eup %485 }
 0x26e   :  { %v341_v21 = vmul.f32 %v486_v20, %v284_v61 }
 0x270   :  { %348 = vst [vmem:[#allocation11] sm:$0xff] %v341_v21 }
 0x271   :  { %v488_v22 = vpop.eup %487 }
 0x272   :  { %v343_v23 = vmul.f32 %v488_v22, %v288_v2 }
 0x274   :  { %349 = vst [vmem:[#allocation11 + $0x8] sm:$0xff] %v343_v23 }
 0x275   :  { %600 = shalt.err (!%p597_p1)
}
 0x276   :  { %385 = dma.vmem_to_hbm [thread:$0]  %s380_s6, 256, %s716_s7, [#allocation10], %s621_s11, %s621_s11, %s622_s12  }
 0x277   :  { %613 = dma.done.wait [#allocation4], 256  }
 0x278   :  { %614 = vsyncadd [#allocation4], 4294967040 }
 0x279   :  { %615 = dma.done.wait [#allocation10], 512  }
 0x27a   :  { %616 = vsyncadd [#allocation10], 4294966784 }
 0x27b   :  { %395 = vsyncpa [#allocation3], 1 }
 0x27c   :  { %396 = vsyncpa [#allocation6], 1 }
 0x27d   :  { %397 = vsyncpa [#allocation4], 1 }
 0x27e   :  { %398 = vsyncpa [#allocation10], 1 }

</bundles_post_ra>
